<compile_context>
chip_gen: v6e
topology: v6e:2x2x1
jax: 0.10.0
libtpu: 0.0.40
codegen_flags: <defaults>
</compile_context>

<pallas_src>
import jax
import jax.numpy as jnp
from jax import lax
from jax.experimental import pallas as pl
from jax.experimental.pallas import tpu as pltpu

EPS = 1e-5


def _bn_kernel(x_ref, gamma_ref, beta_ref, o_ref):
    # x_ref:     (N, C_BLK, HW)  -- channels on sublanes, spatial on lanes
    # gamma_ref: (C_BLK, 1), beta_ref: (C_BLK, 1)
    x = x_ref[...]
    xf = x.astype(jnp.float32)
    n, c_blk, hw = xf.shape
    inv_count = 1.0 / float(n * hw)

    # One traversal: per-channel sum and sum of squares.
    s = jnp.sum(xf, axis=(0, 2), keepdims=True)            # (1, C_BLK, 1)
    ss = jnp.sum(xf * xf, axis=(0, 2), keepdims=True)      # (1, C_BLK, 1)
    mean = s * inv_count
    var = ss * inv_count - mean * mean                      # biased variance
    inv_std = lax.rsqrt(var + EPS)

    gamma = gamma_ref[...].astype(jnp.float32)[None, :, :]  # (1, C_BLK, 1)
    beta = beta_ref[...].astype(jnp.float32)[None, :, :]    # (1, C_BLK, 1)

    scale = gamma * inv_std                                  # (1, C_BLK, 1)
    shift = beta - mean * scale                              # (1, C_BLK, 1)

    # Fused per-element FMA.
    o_ref[...] = (xf * scale + shift).astype(o_ref.dtype)


def _pick_c_block(c, max_blk=128):
    """Largest divisor of c that is a multiple of 8 and <= max_blk."""
    best = None
    blk = 8
    while blk <= min(c, max_blk):
        if c % blk == 0:
            best = blk
        blk += 8
    return best if best is not None else c


def batchnorm2d_pallas(x_nchw, gamma, beta):
    """Training-mode BatchNorm2d forward over an NCHW input (no transposes)."""
    n, c, h, w = x_nchw.shape
    hw = h * w

    # Free reshapes only -- no HBM transpose traffic.
    x3d = x_nchw.reshape(n, c, hw)
    gamma2d = gamma.reshape(c, 1)
    beta2d = beta.reshape(c, 1)

    c_blk = _pick_c_block(c)          # 120 for C=960  -> grid of 8 tiles
    grid = (c // c_blk,)

    out3d = pl.pallas_call(
        _bn_kernel,
        out_shape=jax.ShapeDtypeStruct((n, c, hw), x_nchw.dtype),
        grid=grid,
        in_specs=[
            pl.BlockSpec((n, c_blk, hw), lambda i: (0, i, 0)),
            pl.BlockSpec((c_blk, 1), lambda i: (i, 0)),
            pl.BlockSpec((c_blk, 1), lambda i: (i, 0)),
        ],
        out_specs=pl.BlockSpec((n, c_blk, hw), lambda i: (0, i, 0)),
        compiler_params=pltpu.CompilerParams(
            dimension_semantics=("parallel",)
        ),
    )(x3d, gamma2d, beta2d)

    return out3d.reshape(n, c, h, w)


def _reference_bn(x_nchw, gamma, beta):
    mean = jnp.mean(x_nchw, axis=(0, 2, 3), keepdims=True)
    var = jnp.mean((x_nchw - mean) ** 2, axis=(0, 2, 3), keepdims=True)
    g = gamma.reshape(1, -1, 1, 1)
    b = beta.reshape(1, -1, 1, 1)
    return (x_nchw - mean) * lax.rsqrt(var + EPS) * g + b


if __name__ == "__main__":
    key = jax.random.PRNGKey(0)
    kx, kg, kb = jax.random.split(key, 3)

    # Shapes from the module: x308 = randn([1, 960, 14, 14]), BatchNorm2d(960).
    N, C, H, W = 1, 960, 14, 14
    x = jax.random.normal(kx, (N, C, H, W), dtype=jnp.float32)

    # BatchNorm2d affine params (default init is weight=1, bias=0; perturb
    # deterministically to exercise the affine path).
    gamma = 1.0 + 0.1 * jax.random.normal(kg, (C,), dtype=jnp.float32)
    beta = 0.1 * jax.random.normal(kb, (C,), dtype=jnp.float32)

    out = batchnorm2d_pallas(x, gamma, beta)
    out = jax.block_until_ready(out)

    ref = _reference_bn(x, gamma, beta)
    assert out.shape == (N, C, H, W)
    assert jnp.max(jnp.abs(out - ref)) < 1e-4

    print("KERNEL_OK")
</pallas_src>

<mosaic_0001>
module attributes {stable_mosaic.version = 11 : i64} {
  func.func @_bn_kernel(%arg0: i32, %arg1: memref<1x120x196xf32, #tpu.memory_space<vmem>>, %arg2: memref<120x1xf32, #tpu.memory_space<vmem>>, %arg3: memref<120x1xf32, #tpu.memory_space<vmem>>, %arg4: memref<1x120x196xf32, #tpu.memory_space<vmem>>) attributes {dimension_semantics = [#tpu.dimension_semantics<parallel>], iteration_bounds = array<i64: 8>, scalar_prefetch = 0 : i64, scratch_operands = 0 : i64, tpu.core_type = #tpu.core_type<tc>, window_params = [{transform_indices = @transform_0, window_bounds = array<i64: 1, 120, 196>}, {transform_indices = @transform_1, window_bounds = array<i64: 120, 1>}, {transform_indices = @transform_2, window_bounds = array<i64: 120, 1>}, {transform_indices = @transform_3, window_bounds = array<i64: 1, 120, 196>}]} {
    %c0 = arith.constant 0 : index
    %c0_0 = arith.constant 0 : index
    %c0_1 = arith.constant 0 : index
    %0 = vector.load %arg1[%c0, %c0_0, %c0_1] : memref<1x120x196xf32, #tpu.memory_space<vmem>>, vector<1x120x196xf32>
    %cst = arith.constant dense<0.000000e+00> : vector<120xf32>
    %1 = vector.multi_reduction <add>, %0, %cst [0, 2] : vector<1x120x196xf32> to vector<120xf32>
    %2 = vector.shape_cast %1 : vector<120xf32> to vector<1x120x1xf32>
    %3 = arith.mulf %0, %0 : vector<1x120x196xf32>
    %cst_2 = arith.constant dense<0.000000e+00> : vector<120xf32>
    %4 = vector.multi_reduction <add>, %3, %cst_2 [0, 2] : vector<1x120x196xf32> to vector<120xf32>
    %5 = vector.shape_cast %4 : vector<120xf32> to vector<1x120x1xf32>
    %cst_3 = arith.constant 0.00510204071 : f32
    %6 = vector.broadcast %cst_3 : f32 to vector<1x120x1xf32>
    %7 = arith.mulf %2, %6 : vector<1x120x1xf32>
    %cst_4 = arith.constant 0.00510204071 : f32
    %8 = vector.broadcast %cst_4 : f32 to vector<1x120x1xf32>
    %9 = arith.mulf %5, %8 : vector<1x120x1xf32>
    %10 = arith.mulf %7, %7 : vector<1x120x1xf32>
    %11 = arith.subf %9, %10 : vector<1x120x1xf32>
    %cst_5 = arith.constant 9.99999974E-6 : f32
    %12 = vector.broadcast %cst_5 : f32 to vector<1x120x1xf32>
    %13 = arith.addf %11, %12 : vector<1x120x1xf32>
    %14 = math.rsqrt %13 : vector<1x120x1xf32>
    %c0_6 = arith.constant 0 : index
    %c0_7 = arith.constant 0 : index
    %15 = vector.load %arg2[%c0_6, %c0_7] : memref<120x1xf32, #tpu.memory_space<vmem>>, vector<120x1xf32>
    %16 = vector.shape_cast %15 : vector<120x1xf32> to vector<1x120x1xf32>
    %c0_8 = arith.constant 0 : index
    %c0_9 = arith.constant 0 : index
    %17 = vector.load %arg3[%c0_8, %c0_9] : memref<120x1xf32, #tpu.memory_space<vmem>>, vector<120x1xf32>
    %18 = vector.shape_cast %17 : vector<120x1xf32> to vector<1x120x1xf32>
    %19 = arith.mulf %16, %14 : vector<1x120x1xf32>
    %20 = arith.mulf %7, %19 : vector<1x120x1xf32>
    %21 = arith.subf %18, %20 : vector<1x120x1xf32>
    %22 = vector.broadcast %19 : vector<1x120x1xf32> to vector<1x120x196xf32>
    %23 = arith.mulf %0, %22 : vector<1x120x196xf32>
    %24 = vector.broadcast %21 : vector<1x120x1xf32> to vector<1x120x196xf32>
    %25 = arith.addf %23, %24 : vector<1x120x196xf32>
    %c0_10 = arith.constant 0 : index
    %c0_11 = arith.constant 0 : index
    %c0_12 = arith.constant 0 : index
    %26 = vector.load %arg4[%c0_10, %c0_11, %c0_12] : memref<1x120x196xf32, #tpu.memory_space<vmem>>, vector<1x120x196xf32>
    tpu.vector_store %arg4[%c0_10, %c0_11, %c0_12], %25 {strides = array<i32>} : memref<1x120x196xf32, #tpu.memory_space<vmem>>, vector<1x120x196xf32>,
    return
  }
  func.func @transform_0(%arg0: i32) -> (i32, i32, i32) {
    %c0_i32 = arith.constant 0 : i32
    %c0_i32_0 = arith.constant 0 : i32
    %c0_i32_1 = arith.constant 0 : i32
    return %c0_i32, %arg0, %c0_i32_0 : i32, i32, i32
  }
  func.func @transform_1(%arg0: i32) -> (i32, i32) {
    %c0_i32 = arith.constant 0 : i32
    %c0_i32_0 = arith.constant 0 : i32
    return %arg0, %c0_i32 : i32, i32
  }
  func.func @transform_2(%arg0: i32) -> (i32, i32) {
    %c0_i32 = arith.constant 0 : i32
    %c0_i32_0 = arith.constant 0 : i32
    return %arg0, %c0_i32 : i32, i32
  }
  func.func @transform_3(%arg0: i32) -> (i32, i32, i32) {
    %c0_i32 = arith.constant 0 : i32
    %c0_i32_0 = arith.constant 0 : i32
    %c0_i32_1 = arith.constant 0 : i32
    return %c0_i32, %arg0, %c0_i32_0 : i32, i32, i32
  }
}

</mosaic_0001>

<bundles_post_ra>
// kernel: tpu_custom_call.1
= control target key start
LH: loop header
LB: loop body
LE: loop exit
PB: predicated region body
PF: predicated region fallthrough
CT: control target
= control target key end

     0   :  { %s976_s12 = smov 0   ;;  %s1476_s0 = inlined_call_operand.vmem [shape: f32[1,960,196], index: 0, kind: input, shape index: {}]   ;;  %s1477_s1 = inlined_call_operand.vmem [shape: f32[960,1], index: 1, kind: input, shape index: {}]   ;;  %s1478_s2 = inlined_call_operand.vmem [shape: f32[960,1], index: 2, kind: input, shape index: {}]   ;;  %s1479_s3 = inlined_call_operand.vmem [shape: f32[1,960,196], index: 3, kind: output, shape index: {}]  }
   0x1 LB: > { %s891_s13 = sadd.s32 4294967295, %s953_s12   ;;  %p895_p0 = scmp.ge.s32.totalorder %s953_s12, 1  ;;  %s953_s12 = sphi %s976_s12, %s13_s12  }
   0x2   : > { %p161_p1 = scmp.lt.s32.totalorder %s953_s12, 9 }
   0x4   : > { %p162_p2 = pnand %p895_p0, %p161_p1 }
   0x6   : > { %165 = sbr.rel (%p162_p2) target bundleno = 410 (0x19a), region = 32 }
   0xb   : > { %s197_s14 = smul.u32 15, %s891_s13  ;;  %vm253_vm0 = vcmask 556032  }
   0xd   : > { %p198_p3 = scmp.lt.s32.totalorder %s197_s14, 119 }
   0xf   : > { %s1499_s14 = smov (!%p198_p3, %s197_s14), 119 }
  0x10   : > { %s904_s15 = sshll.u32 %s1499_s14, 4  ;;  %s898_s19 = sshll.u32 %s1499_s14, 3 }
  0x11   : > { %s992_s18 = scalar_lea.vmem %s1476_s0, %s904_s15  ;;  %s1246_s22 = scalar_lea.vmem %s1477_s1, %s898_s19 }
  0x12   : > { %v995_v0 = vld [vmem:[%s992_s18 + $0x20] sm:$0xff]  ;;  %v998_v1 = vld [vmem:[%s992_s18 + $0x28] sm:$0xff]  ;;  %v1009_v5 = vld [vmem:[%s992_s18 + $0x30] sm:$0xff]  ;;  %s1324_s25 = scalar_lea.vmem %s1478_s2, %s898_s19  ;;  %s1388_s28 = scalar_lea.vmem %s1479_s3, %s904_s15 }
  0x13   : > { %v1001_v2 = vld [vmem:[%s992_s18] sm:$0xff]  ;;  %v262_v3 = vsel %vm253_vm0, %v998_v1, 0.0  ;;  %v1006_v4 = vld [vmem:[%s992_s18 + $0x8] sm:$0xff]  ;;  %v1012_v6 = vld [vmem:[%s992_s18 + $0x38] sm:$0xff]  ;;  %v319_v60 = vmul.f32 %v998_v1, %v998_v1 }
  0x14   : > { %v263_v7 = vadd.f32 %v262_v3, %v995_v0  ;;  %v254_v8 = vsel %vm253_vm0, %v1006_v4, 0.0  ;;  %v266_v9 = vsel %vm253_vm0, %v1012_v6, 0.0  ;;  %v1020_v10 = vld [vmem:[%s992_s18 + $0x10] sm:$0xff]  ;;  %v1023_v11 = vld [vmem:[%s992_s18 + $0x18] sm:$0xff]  ;;  %v1032_v15 = vld [vmem:[%s992_s18 + $0x48] sm:$0xff]  ;;  %v315_v52 = vmul.f32 %v1006_v4, %v1006_v4 }
  0x15   : > { %v255_v12 = vadd.f32 %v254_v8, %v1001_v2  ;;  %v258_v13 = vsel %vm253_vm0, %v1023_v11, 0.0  ;;  %v1029_v14 = vld [vmem:[%s992_s18 + $0x58] sm:$0xff]  ;;  %v267_v16 = vadd.f32 %v266_v9, %v1009_v5  ;;  %v1037_v18 = vld [vmem:[%s992_s18 + $0x50] sm:$0xff]  ;;  %v1042_v20 = vld [vmem:[%s992_s18 + $0x40] sm:$0xff]  ;;  %v270_v21 = vsel %vm253_vm0, %v1032_v15, 0.0 }
  0x16   : > { %264 = vadd.xlane.f32.xlu1 %v263_v7  ;;  %v259_v17 = vadd.f32 %v258_v13, %v1020_v10  ;;  %v274_v19 = vsel %vm253_vm0, %v1029_v14, 0.0  ;;  %v1047_v22 = vld [vmem:[%s992_s18 + $0x78] sm:$0xff]  ;;  %v1050_v23 = vld [vmem:[%s992_s18 + $0x68] sm:$0xff]  ;;  %v271_v25 = vadd.f32 %v270_v21, %v1042_v20  ;;  %v1055_v26 = vld [vmem:[%s992_s18 + $0x70] sm:$0xff]  ;;  %v314_v57 = vmul.f32 %v1001_v2, %v1001_v2 }
  0x17   : > { %256 = vadd.xlane.f32.xlu0 %v255_v12  ;;  %v275_v24 = vadd.f32 %v274_v19, %v1037_v18  ;;  %v282_v27 = vsel %vm253_vm0, %v1047_v22, 0.0  ;;  %v1060_v28 = vld [vmem:[%s992_s18 + $0x60] sm:$0xff]  ;;  %v278_v29 = vsel %vm253_vm0, %v1050_v23, 0.0  ;;  %v1065_v30 = vld [vmem:[%s992_s18 + $0x98] sm:$0xff]  ;;  %v1068_v31 = vld [vmem:[%s992_s18 + $0x88] sm:$0xff]  ;;  %v344_v59 = vsel %vm253_vm0, %v315_v52, 0.0 }
  0x18   : > { %1486 = vst [vmem:[#allocation2_spill] sm:$0xff] %v1065_v30  ;;  %v283_v32 = vadd.f32 %v282_v27, %v1055_v26  ;;  %v279_v33 = vadd.f32 %v278_v29, %v1060_v28  ;;  %v1073_v34 = vld [vmem:[%s992_s18 + $0x90] sm:$0xff]  ;;  %v290_v35 = vsel %vm253_vm0, %v1065_v30, 0.0  ;;  %v1078_v36 = vld [vmem:[%s992_s18 + $0x80] sm:$0xff]  ;;  %v286_v37 = vsel %vm253_vm0, %v1068_v31, 0.0  ;;  %v1083_v38 = vld [vmem:[%s992_s18 + $0xb8] sm:$0xff] }
  0x19   : > { %1487 = vst [vmem:[#allocation3_spill] sm:$0xff] %v1073_v34  ;;  %1488 = vst [vmem:[#allocation4_spill] sm:$0xff] %v1083_v38  ;;  %v1086_v39 = vld [vmem:[%s992_s18 + $0xa8] sm:$0xff]  ;;  %v291_v40 = vadd.f32 %v290_v35, %v1073_v34  ;;  %v287_v41 = vadd.f32 %v286_v37, %v1078_v36  ;;  %v1091_v42 = vld [vmem:[%s992_s18 + $0xb0] sm:$0xff]  ;;  %v298_v43 = vsel %vm253_vm0, %v1083_v38, 0.0  ;;  %v317_v63 = vmul.f32 %v1023_v11, %v1023_v11 }
  0x1a   : > { %268 = vadd.xlane.f32.xlu1 %v267_v16  ;;  %1489 = vst [vmem:[#allocation5_spill] sm:$0xff] %v1091_v42  ;;  %v1096_v44 = vld [vmem:[%s992_s18 + $0xa0] sm:$0xff]  ;;  %v294_v45 = vsel %vm253_vm0, %v1086_v39, 0.0  ;;  %v1101_v46 = vld [vmem:[%s992_s18 + $0xd8] sm:$0xff]  ;;  %v1104_v47 = vld [vmem:[%s992_s18 + $0xc8] sm:$0xff]  ;;  %v299_v48 = vadd.f32 %v298_v43, %v1091_v42  ;;  %v345_v3 = vadd.f32 %v344_v59, %v314_v57  ;;  %v318_v7 = vmul.f32 %v995_v0, %v995_v0 }
  0x1b   : > { %260 = vadd.xlane.f32.xlu0 %v259_v17  ;;  %1490 = vst [vmem:[#allocation6_spill] sm:$0xff] %v1101_v46  ;;  %v295_v49 = vadd.f32 %v294_v45, %v1096_v44  ;;  %v1109_v50 = vld [vmem:[%s992_s18 + $0xd0] sm:$0xff]  ;;  %v306_v51 = vsel %vm253_vm0, %v1101_v46, 0.0  ;;  %v1116_v53 = vld [vmem:[%s992_s18 + $0xc0] sm:$0xff]  ;;  %v302_v54 = vsel %vm253_vm0, %v1104_v47, 0.0  ;;  %v1121_v55 = vld [vmem:[%s992_s18 + $0xe8] sm:$0xff]  ;;  %v316_v12 = vmul.f32 %v1020_v10, %v1020_v10 }
  0x1c   : > { %1491 = vst [vmem:[#allocation7_spill] sm:$0xff] %v1109_v50  ;;  %v307_v56 = vadd.f32 %v306_v51, %v1109_v50  ;;  %v303_v58 = vadd.f32 %v302_v54, %v1116_v53  ;;  %v1131_v61 = vld [vmem:[%s992_s18 + $0xe0] sm:$0xff]  ;;  %v310_v62 = vsel %vm253_vm0, %v1121_v55, 0.0  ;;  %v352_v9 = vsel %vm253_vm0, %v319_v60, 0.0 }
  0x1d   : > { %v311_v8 = vadd.f32 %v310_v62, %v1131_v61  ;;  %v323_v13 = vmul.f32 %v1032_v15, %v1032_v15  ;;  %v348_v16 = vsel %vm253_vm0, %v317_v63, 0.0  ;;  %v321_v17 = vmul.f32 %v1012_v6, %v1012_v6 }
  0x1e   : > { %276 = vadd.xlane.f32.xlu1 %v275_v24  ;;  %v353_v19 = vadd.f32 %v352_v9, %v318_v7  ;;  %v322_v21 = vmul.f32 %v1042_v20, %v1042_v20  ;;  %v349_v24 = vadd.f32 %v348_v16, %v316_v12  ;;  %v320_v27 = vmul.f32 %v1009_v5, %v1009_v5 }
  0x1f   : > { %272 = vadd.xlane.f32.xlu0 %v271_v25  ;;  %v360_v25 = vsel %vm253_vm0, %v323_v13, 0.0  ;;  %v327_v29 = vmul.f32 %v1050_v23, %v1050_v23  ;;  %v326_v37 = vmul.f32 %v1060_v28, %v1060_v28  ;;  %v324_v43 = vmul.f32 %v1037_v18, %v1037_v18 }
  0x20   : > { %v361_v35 = vadd.f32 %v360_v25, %v322_v21  ;;  %v331_v45 = vmul.f32 %v1068_v31, %v1068_v31  ;;  %v330_v52 = vmul.f32 %v1078_v36, %v1078_v36  ;;  %v328_v57 = vmul.f32 %v1055_v26, %v1055_v26 }
  0x21   : > { %v333_v60 = vmul.f32 %v1065_v30, %v1065_v30  ;;  %v334_v63 = vmul.f32 %v1096_v44, %v1096_v44  ;;  %v339_v9 = vmul.f32 %v1104_v47, %v1104_v47  ;;  %v337_v13 = vmul.f32 %v1083_v38, %v1083_v38 }
  0x22   : > { %284 = vadd.xlane.f32.xlu1 %v283_v32  ;;  %v356_v32 = vsel %vm253_vm0, %v321_v17, 0.0  ;;  %v338_v17 = vmul.f32 %v1116_v53, %v1116_v53  ;;  %v343_v25 = vmul.f32 %v1121_v55, %v1121_v55 }
  0x23   : > { %280 = vadd.xlane.f32.xlu0 %v279_v33  ;;  %v325_v33 = vmul.f32 %v1029_v14, %v1029_v14  ;;  %v380_v12 = vsel %vm253_vm0, %v333_v60, 0.0  ;;  %v392_v21 = vsel %vm253_vm0, %v339_v9, 0.0 }
  0x26   : > { %292 = vadd.xlane.f32.xlu1 %v291_v40  ;;  %v357_v40 = vadd.f32 %v356_v32, %v320_v27  ;;  %v388_v27 = vsel %vm253_vm0, %v337_v13, 0.0  ;;  %v393_v32 = vadd.f32 %v392_v21, %v338_v17 }
  0x27   : > { %288 = vadd.xlane.f32.xlu0 %v287_v41  ;;  %v368_v41 = vsel %vm253_vm0, %v327_v29, 0.0  ;;  %v341_v29 = vmul.f32 %v1101_v46, %v1101_v46 }
  0x28   : > { %v369_v51 = vadd.f32 %v368_v41, %v326_v37  ;;  %v400_v37 = vsel %vm253_vm0, %v343_v25, 0.0 }
  0x29   : > { %v396_v41 = vsel %vm253_vm0, %v341_v29, 0.0 }
  0x2a   : > { %300 = vadd.xlane.f32.xlu1 %v299_v48  ;;  %v364_v48 = vsel %vm253_vm0, %v325_v33, 0.0  ;;  %v342_v33 = vmul.f32 %v1131_v61, %v1131_v61 }
  0x2b   : > { %296 = vadd.xlane.f32.xlu0 %v295_v49  ;;  %v329_v49 = vmul.f32 %v1047_v22, %v1047_v22  ;;  %v365_v54 = vadd.f32 %v364_v48, %v324_v43  ;;  %v955_v48 = vmov 0  }
  0x2c   : > { %v401_v43 = vadd.f32 %v400_v37, %v342_v33  ;;  %915 = vset.pattern.permute.xlu0 %v955_v48  ;;  %916 = vset.pattern.permute.xlu1 %v955_v48 }
  0x2d   : > { %v372_v59 = vsel %vm253_vm0, %v329_v49, 0.0 }
  0x2e   : > { %308 = vadd.xlane.f32.xlu1 %v307_v56  ;;  %v376_v56 = vsel %vm253_vm0, %v331_v45, 0.0 }
  0x2f   : > { %304 = vadd.xlane.f32.xlu0 %v303_v58  ;;  %v335_v58 = vmul.f32 %v1086_v39, %v1086_v39  ;;  %v377_v62 = vadd.f32 %v376_v56, %v330_v52 }
  0x31   : > { %v384_v7 = vsel %vm253_vm0, %v335_v58, 0.0 }
  0x32   : > { %346 = vadd.xlane.f32.xlu1 %v345_v3  ;;  %v373_v3 = vadd.f32 %v372_v59, %v328_v57  ;;  %v385_v16 = vadd.f32 %v384_v7, %v334_v63 }
  0x33   : > { %312 = vadd.xlane.f32.xlu0 %v311_v8  ;;  %v332_v8 = vmul.f32 %v1073_v34, %v1073_v34  ;;  %v513_v34 = vld [vmem:[%s1324_s25 + $0x20] sm:$0xff] }
  0x36   : > { %354 = vadd.xlane.f32.xlu1 %v353_v19  ;;  %v381_v19 = vadd.f32 %v380_v12, %v332_v8 }
  0x37   : > { %350 = vadd.xlane.f32.xlu0 %v349_v24  ;;  %v336_v24 = vmul.f32 %v1091_v42, %v1091_v42 }
  0x3a   : > { %362 = vadd.xlane.f32.xlu1 %v361_v35  ;;  %v389_v35 = vadd.f32 %v388_v27, %v336_v24 }
  0x3b   : > { %358 = vadd.xlane.f32.xlu0 %v357_v40  ;;  %v340_v40 = vmul.f32 %v1109_v50, %v1109_v50 }
  0x3d   : > { %v397_v45 = vadd.f32 %v396_v41, %v340_v40 }
  0x3e   : > { %370 = vadd.xlane.f32.xlu1 %v369_v51 }
  0x3f   : > { %366 = vadd.xlane.f32.xlu0 %v365_v54 }
  0x42   : > { %378 = vadd.xlane.f32.xlu1 %v377_v62 }
  0x43   : > { %374 = vadd.xlane.f32.xlu0 %v373_v3 }
  0x46   : > { %386 = vadd.xlane.f32.xlu1 %v385_v16 }
  0x47   : > { %382 = vadd.xlane.f32.xlu0 %v381_v19 }
  0x4a   : > { %394 = vadd.xlane.f32.xlu1 %v393_v32 }
  0x4b   : > { %390 = vadd.xlane.f32.xlu0 %v389_v35 }
  0x4e   : > { %402 = vadd.xlane.f32.xlu1 %v401_v43 }
  0x4f   : > { %398 = vadd.xlane.f32.xlu0 %v397_v45 }
  0x9f   : > { %v265_v49 = vpop.xlane.xlu1 %264 }
  0xa0   : > { %v257_v51 = vpop.xlane.xlu0 %256  ;;  %v1214_v13 = vmul.f32 0.0051020407, %v265_v49 }
  0xa1   : > { %v1210_v8 = vmul.f32 0.0051020407, %v257_v51 }
  0xa2   : > { %v436_v27 = vmul.f32 %v1214_v13, %v1214_v13 }
  0xa3   : > { %v269_v52 = vpop.xlane.xlu1 %268  ;;  %v434_v16 = vmul.f32 %v1210_v8, %v1210_v8 }
  0xa4   : > { %v261_v54 = vpop.xlane.xlu0 %260  ;;  %v1224_v35 = vmul.f32 0.0051020407, %v269_v52 }
  0xa5   : > { %v1220_v21 = vmul.f32 0.0051020407, %v261_v54 }
  0xa6   : > { %v437_v54 = vmul.f32 %v1224_v35, %v1224_v35 }
  0xa7   : > { %v277_v56 = vpop.xlane.xlu1 %276  ;;  %v435_v37 = vmul.f32 %v1220_v21, %v1220_v21 }
  0xa8   : > { %v273_v57 = vpop.xlane.xlu0 %272 }
  0xa9   : > { %v1228_v43 = vmul.f32 0.0051020407, %v273_v57 }
  0xab   : > { %v285_v58 = vpop.xlane.xlu1 %284 }
  0xac   : > { %v281_v59 = vpop.xlane.xlu0 %280 }
  0xaf   : > { %v293_v60 = vpop.xlane.xlu1 %292 }
  0xb0   : > { %v1204_v62 = vpop.xlane.xlu0 %288 }
  0xb3   : > { %v301_v63 = vpop.xlane.xlu1 %300 }
  0xb4   : > { %v1206_v3 = vpop.xlane.xlu0 %296 }
  0xb5   : > { %v1278_v30 = vmul.f32 0.0051020407, %v1206_v3 }
  0xb7   : > { %v1208_v7 = vpop.xlane.xlu1 %308 }
  0xb8   : > { %v1212_v9 = vpop.xlane.xlu0 %304 }
  0xbb   : > { %v347_v12 = vpop.xlane.xlu1 %346 }
  0xbc   : > { %v419_v17 = vmul.f32 0.0051020407, %v347_v12  ;;  %v1218_v19 = vpop.xlane.xlu0 %312 }
  0xbe   : > { %v449_v24 = vsub.f32 %v419_v17, %v434_v16  ;;  %v1232_v17 = vmul.f32 0.0051020407, %v277_v56 }
  0xbf   : > { %v355_v25 = vpop.xlane.xlu1 %354 }
  0xc0   : > { %v464_v29 = vadd.f32 1e-05, %v449_v24  ;;  %v421_v32 = vmul.f32 0.0051020407, %v355_v25  ;;  %v351_v33 = vpop.xlane.xlu0 %350  ;;  %v438_v24 = vmul.f32 %v1228_v43, %v1228_v43 }
  0xc1   : > { %v420_v40 = vmul.f32 0.0051020407, %v351_v33 }
  0xc2   : > { %917 = vrsqrt.f32 %v464_v29  ;;  %v451_v41 = vsub.f32 %v421_v32, %v436_v27 }
  0xc3   : > { %v450_v45 = vsub.f32 %v420_v40, %v435_v37  ;;  %v363_v48 = vpop.xlane.xlu1 %362  ;;  %v439_v37 = vmul.f32 %v1232_v17, %v1232_v17  ;;  %v1239_v40 = vmul.f32 0.0051020407, %v281_v59 }
  0xc4   : > { %v466_v49 = vadd.f32 1e-05, %v451_v41  ;;  %v359_v51 = vpop.xlane.xlu0 %358  ;;  %v423_v52 = vmul.f32 0.0051020407, %v363_v48 }
  0xc5   : > { %v465_v12 = vadd.f32 1e-05, %v450_v45  ;;  %v422_v16 = vmul.f32 0.0051020407, %v359_v51  ;;  %v440_v59 = vmul.f32 %v1239_v40, %v1239_v40 }
  0xc6   : > { %v453_v29 = vsub.f32 %v423_v52, %v438_v24  ;;  %v1253_v52 = vmul.f32 0.0051020407, %v285_v58  ;;  %v495_v58 = vld [vmem:[%s1246_s22 + $0x8] sm:$0xff] }
  0xc7   : > { %919 = vrsqrt.f32 %v465_v12  ;;  %v452_v25 = vsub.f32 %v422_v16, %v437_v54  ;;  %v371_v57 = vpop.xlane.xlu1 %370  ;;  %v494_v54 = vld [vmem:[%s1246_s22] sm:$0xff]  ;;  %v1255_v16 = vmul.f32 0.0051020407, %v301_v63 }
  0xc8   : > { %v367_v27 = vpop.xlane.xlu0 %366  ;;  %921 = vrsqrt.f32 %v466_v49  ;;  %v425_v56 = vmul.f32 0.0051020407, %v371_v57  ;;  %v1248_v49 = vmul.f32 0.0051020407, %v293_v60  ;;  %v468_v51 = vadd.f32 1e-05, %v453_v29 }
  0xc9   : > { %v467_v32 = vadd.f32 1e-05, %v452_v25  ;;  %v424_v33 = vmul.f32 0.0051020407, %v367_v27  ;;  %v441_v63 = vmul.f32 %v1253_v52, %v1253_v52 }
  0xca   : > { %v455_v24 = vsub.f32 %v425_v56, %v440_v59  ;;  %v443_v60 = vmul.f32 %v1248_v49, %v1248_v49  ;;  %v445_v56 = vmul.f32 %v1255_v16, %v1255_v16 }
  0xcb   : > { %v454_v41 = vsub.f32 %v424_v33, %v439_v37  ;;  %v379_v45 = vpop.xlane.xlu1 %378  ;;  %923 = vrsqrt.f32 %v467_v32  ;;  %v1262_v33 = vmul.f32 0.0051020407, %v1204_v62 }
  0xcc   : > { %v375_v48 = vpop.xlane.xlu0 %374  ;;  %925 = vrsqrt.f32 %v468_v51  ;;  %v1271_v51 = vmul.f32 0.0051020407, %v1208_v7  ;;  %v427_v62 = vmul.f32 0.0051020407, %v379_v45 }
  0xcd   : > { %v469_v25 = vadd.f32 1e-05, %v454_v41  ;;  %v426_v29 = vmul.f32 0.0051020407, %v375_v48  ;;  %v470_v48 = vadd.f32 1e-05, %v455_v24  ;;  %v442_v42 = vmul.f32 %v1262_v33, %v1262_v33 }
  0xce   : > { %v447_v45 = vmul.f32 %v1271_v51, %v1271_v51 }
  0xcf   : > { %v918_v12 = vpop.eup %917  ;;  %v387_v37 = vpop.xlane.xlu1 %386  ;;  %927 = vrsqrt.f32 %v469_v25  ;;  %v457_v24 = vsub.f32 %v427_v62, %v442_v42 }
  0xd0   : > { %v383_v57 = vpop.xlane.xlu0 %382  ;;  %v1257_v27 = vmul.f32 %v918_v12, %v494_v54  ;;  %v456_v12 = vsub.f32 %v426_v29, %v441_v63  ;;  %v429_v25 = vmul.f32 0.0051020407, %v387_v37 }
  0xd1   : > { %v428_v32 = vmul.f32 0.0051020407, %v383_v57  ;;  %v472_v42 = vadd.f32 1e-05, %v457_v24 }
  0xd2   : > { %571 = vperm.xlu0 %915, %v1257_v27  }
  0xd3   : > { %v458_v41 = vsub.f32 %v428_v32, %v443_v60  ;;  %v496_v60 = vld [vmem:[%s1246_s22 + $0x10] sm:$0xff]  ;;  %v395_v29 = vpop.xlane.xlu1 %394 }
  0xd4   : > { %v920_v54 = vpop.eup %919  ;;  %v391_v59 = vpop.xlane.xlu0 %390  ;;  %v431_v62 = vmul.f32 0.0051020407, %v395_v29 }
  0xd5   : > { %v473_v57 = vadd.f32 1e-05, %v458_v41  ;;  %v430_v46 = vmul.f32 0.0051020407, %v391_v59  ;;  %v1273_v50 = vmul.f32 %v920_v54, %v495_v58  ;;  %v922_v38 = vpop.eup %921  ;;  %v471_v58 = vadd.f32 1e-05, %v456_v12 }
  0xd6   : > { %v1284_v54 = vmul.f32 %v922_v38, %v496_v60  ;;  %v1290_v59 = vmul.f32 0.0051020407, %v1212_v9 }
  0xd7   : > { %929 = vrsqrt.f32 %v473_v57  ;;  %v460_v7 = vsub.f32 %v430_v46, %v445_v56  ;;  %576 = vperm.xlu1 %916, %v1273_v50   ;;  %v444_v46 = vmul.f32 %v1278_v30, %v1278_v30  ;;  %v497_v56 = vld [vmem:[%s1246_s22 + $0x18] sm:$0xff]  ;;  %v403_v60 = vpop.xlane.xlu1 %402 }
  0xd8   : > { %931 = vrsqrt.f32 %v470_v48  ;;  %v399_v32 = vpop.xlane.xlu0 %398  ;;  %v924_v3 = vpop.eup %923  ;;  %v446_v9 = vmul.f32 %v1290_v59, %v1290_v59  ;;  %v433_v29 = vmul.f32 0.0051020407, %v403_v60 }
  0xd9   : > { %v475_v63 = vadd.f32 1e-05, %v460_v7  ;;  %v432_v41 = vmul.f32 0.0051020407, %v399_v32  ;;  %v459_v37 = vsub.f32 %v429_v25, %v444_v46  ;;  %v1293_v12 = vmul.f32 %v924_v3, %v497_v56  ;;  %v926_v57 = vpop.eup %925  ;;  %v498_v7 = vld [vmem:[%s1246_s22 + $0x20] sm:$0xff] }
  0xda   : > { %v1299_v32 = vmul.f32 0.0051020407, %v1218_v19  ;;  %v461_v25 = vsub.f32 %v431_v62, %v446_v9  ;;  %v500_v62 = vld [vmem:[%s1246_s22 + $0x30] sm:$0xff] }
  0xdb   : > { %933 = vrsqrt.f32 %v475_v63  ;;  %v462_v48 = vsub.f32 %v432_v41, %v447_v45  ;;  %581 = vperm.xlu1 %916, %v1284_v54   ;;  %v474_v45 = vadd.f32 1e-05, %v459_v37  ;;  %v499_v63 = vld [vmem:[%s1246_s22 + $0x28] sm:$0xff] }
  0xdc   : > { %935 = vrsqrt.f32 %v471_v58  ;;  %v928_v24 = vpop.eup %927  ;;  %v528_v58 = vmul.f32 %v926_v57, %v498_v7  ;;  %v503_v41 = vld [vmem:[%s1246_s22 + $0x48] sm:$0xff]  ;;  %v448_v3 = vmul.f32 %v1299_v32, %v1299_v32  ;;  %v476_v56 = vadd.f32 1e-05, %v461_v25  ;;  %v501_v25 = vld [vmem:[%s1246_s22 + $0x38] sm:$0xff] }
  0xdd   : > { %v477_v38 = vadd.f32 1e-05, %v462_v48  ;;  %v1306_v37 = vmul.f32 %v928_v24, %v499_v63  ;;  %v507_v24 = vld [vmem:[%s1246_s22 + $0x68] sm:$0xff] }
  0xde   : > { %v463_v48 = vsub.f32 %v433_v29, %v448_v3  ;;  %v539_v3 = vmul.f32 %v1257_v27, %v1210_v8 }
  0xdf   : > { %937 = vrsqrt.f32 %v477_v38  ;;  %586 = vperm.xlu1 %916, %v1293_v12   ;;  %v505_v38 = vld [vmem:[%s1246_s22 + $0x58] sm:$0xff] }
  0xe0   : > { %939 = vrsqrt.f32 %v472_v42  ;;  %v478_v60 = vadd.f32 1e-05, %v463_v48 }
  0xe1   : > { %941 = vrsqrt.f32 %v474_v45 }
  0xe2   : > { %943 = vrsqrt.f32 %v476_v56  ;;  %v509_v56 = vld [vmem:[%s1324_s25] sm:$0xff] }
  0xe3   : > { %591 = vperm.xlu1 %916, %v528_v58   ;;  %945 = vrsqrt.f32 %v478_v60  ;;  %v504_v60 = vld [vmem:[%s1246_s22 + $0x50] sm:$0xff] }
  0xe4   : > { %v930_v46 = vpop.eup %929 }
  0xe5   : > { %v932_v19 = vpop.eup %931  ;;  %v1308_v42 = vmul.f32 %v930_v46, %v503_v41 }
  0xe6   : > { %v530_v7 = vmul.f32 %v932_v19, %v500_v62  ;;  %v502_v19 = vld [vmem:[%s1246_s22 + $0x40] sm:$0xff] }
  0xe7   : > { %596 = vperm.xlu1 %916, %v1306_v37   ;;  %616 = vperm.xlu0 %915, %v1308_v42  }
  0xe8   : > { %v934_v57 = vpop.eup %933 }
  0xe9   : > { %v1314_v9 = vmul.f32 %v934_v57, %v505_v38  ;;  %v936_v45 = vpop.eup %935  ;;  %v554_v38 = vsub.f32 %v509_v56, %v539_v3  ;;  %v541_v57 = vmul.f32 %v1284_v54, %v1214_v13  ;;  %v545_v13 = vmul.f32 %v530_v7, %v1239_v40  ;;  %v515_v56 = vld [vmem:[%s1324_s25 + $0x30] sm:$0xff] }
  0xea   : > { %v531_v63 = vmul.f32 %v936_v45, %v501_v25  ;;  %v511_v45 = vld [vmem:[%s1324_s25 + $0x10] sm:$0xff]  ;;  %v543_v25 = vmul.f32 %v528_v58, %v1228_v43  ;;  %v540_v58 = vmul.f32 %v1273_v50, %v1220_v21 }
  0xeb   : > { %601 = vperm.xlu1 %916, %v530_v7   ;;  %626 = vperm.xlu0 %915, %v1314_v9   ;;  %v556_v27 = vsub.f32 %v511_v45, %v541_v57  ;;  %v560_v43 = vsub.f32 %v515_v56, %v545_v13  ;;  %v510_v57 = vld [vmem:[%s1324_s25 + $0x8] sm:$0xff]  ;;  %v542_v7 = vmul.f32 %v1293_v12, %v1224_v35  ;;  %v523_v13 = vld [vmem:[%s1324_s25 + $0x70] sm:$0xff] }
  0xec   : > { %v938_v29 = vpop.eup %937  ;;  %v546_v12 = vmul.f32 %v531_v63, %v1253_v52  ;;  %v520_v52 = vld [vmem:[%s1324_s25 + $0x58] sm:$0xff]  ;;  %v522_v56 = vld [vmem:[%s1324_s25 + $0x68] sm:$0xff] }
  0xed   : > { %v1326_v41 = vmul.f32 %v938_v29, %v507_v24  ;;  %v940_v46 = vpop.eup %939  ;;  %v506_v29 = vld [vmem:[%s1246_s22 + $0x60] sm:$0xff] }
  0xee   : > { %v942_v48 = vpop.eup %941  ;;  %v532_v62 = vmul.f32 %v940_v46, %v502_v19  ;;  %v558_v46 = vsub.f32 %v513_v34, %v543_v25  ;;  %v508_v19 = vld [vmem:[%s1246_s22 + $0x70] sm:$0xff]  ;;  %v555_v34 = vsub.f32 %v510_v57, %v540_v58 }
  0xef   : > { %606 = vperm.xlu1 %916, %v531_v63   ;;  %636 = vperm.xlu0 %915, %v1326_v41   ;;  %v534_v8 = vmul.f32 %v942_v48, %v504_v60  ;;  %v944_v24 = vpop.eup %943  ;;  %v517_v60 = vld [vmem:[%s1324_s25 + $0x40] sm:$0xff]  ;;  %v519_v25 = vld [vmem:[%s1324_s25 + $0x50] sm:$0xff]  ;;  %v552_v63 = vmul.f32 %v1326_v41, %v1271_v51 }
  0xf0   : > { %v536_v3 = vmul.f32 %v944_v24, %v506_v29  ;;  %v946_v54 = vpop.eup %945  ;;  %v514_v24 = vld [vmem:[%s1324_s25 + $0x28] sm:$0xff]  ;;  %v521_v29 = vld [vmem:[%s1324_s25 + $0x60] sm:$0xff] }
  0xf1   : > { %v538_v48 = vmul.f32 %v946_v54, %v508_v19  ;;  %v549_v45 = vmul.f32 %v534_v8, %v1278_v30  ;;  %v550_v19 = vmul.f32 %v1314_v9, %v1255_v16 }
  0xf3   : > { %611 = vperm.xlu1 %916, %v532_v62   ;;  %676 = vperm.xlu0 %915, %v554_v38   ;;  %v547_v38 = vmul.f32 %v532_v62, %v1262_v33  ;;  %v564_v21 = vsub.f32 %v519_v25, %v549_v45  ;;  %v544_v33 = vmul.f32 %v1306_v37, %v1232_v17 }
  0xf4   : > { %v551_v62 = vmul.f32 %v536_v3, %v1290_v59  ;;  %v548_v59 = vmul.f32 %v1308_v42, %v1248_v49 }
  0xf5   : > { %v562_v40 = vsub.f32 %v517_v60, %v547_v38  ;;  %v559_v35 = vsub.f32 %v514_v24, %v544_v33 }
  0xf6   : > { %v566_v30 = vsub.f32 %v521_v29, %v551_v62 }
  0xf7   : > { %621 = vperm.xlu1 %916, %v534_v8   ;;  %686 = vperm.xlu0 %915, %v556_v27   ;;  %v512_v27 = vld [vmem:[%s1324_s25 + $0x18] sm:$0xff]  ;;  %v553_v8 = vmul.f32 %v538_v48, %v1299_v32  ;;  %v565_v32 = vsub.f32 %v520_v52, %v550_v19 }
  0xf8   : > { %v557_v50 = vsub.f32 %v512_v27, %v542_v7 }
  0xf9   : > { %v568_v37 = vsub.f32 %v523_v13, %v553_v8 }
  0xfb   : > { %631 = vperm.xlu1 %916, %v536_v3   ;;  %696 = vperm.xlu0 %915, %v558_v46   ;;  %v516_v46 = vld [vmem:[%s1324_s25 + $0x38] sm:$0xff]  ;;  %v518_v3 = vld [vmem:[%s1324_s25 + $0x48] sm:$0xff] }
  0xfc   : > { %v561_v17 = vsub.f32 %v516_v46, %v546_v12  ;;  %v563_v54 = vsub.f32 %v518_v3, %v548_v59 }
  0xff   : > { %641 = vperm.xlu1 %916, %v538_v48   ;;  %706 = vperm.xlu0 %915, %v560_v43   ;;  %v567_v48 = vsub.f32 %v522_v56, %v552_v63 }
 0x103   : > { %681 = vperm.xlu1 %916, %v555_v34   ;;  %716 = vperm.xlu0 %915, %v562_v40  }
 0x107   : > { %691 = vperm.xlu1 %916, %v557_v50   ;;  %726 = vperm.xlu0 %915, %v564_v21  }
 0x10b   : > { %701 = vperm.xlu1 %916, %v559_v35   ;;  %736 = vperm.xlu0 %915, %v566_v30  }
 0x10f   : > { %711 = vperm.xlu1 %916, %v561_v17   ;;  %746 = vperm.xlu0 %915, %v568_v37  }
 0x113   : > { %721 = vperm.xlu1 %916, %v563_v54  }
 0x117   : > { %731 = vperm.xlu1 %916, %v565_v32  }
 0x11b   : > { %741 = vperm.xlu1 %916, %v567_v48  }
 0x14d   : > { %v572_v58 = vpop.permute.xlu0 %571 }
 0x14e   : > { %v644_v41 = vmul.f32 %v572_v58, %v1001_v2  ;;  %v645_v40 = vmul.f32 %v572_v58, %v1006_v4 }
 0x152   : > { %v577_v43 = vpop.permute.xlu1 %576 }
 0x153   : > { %v646_v17 = vmul.f32 %v577_v43, %v1020_v10  ;;  %v647_v37 = vmul.f32 %v577_v43, %v1023_v11 }
 0x156   : > { %v582_v49 = vpop.permute.xlu1 %581 }
 0x157   : > { %v648_v50 = vmul.f32 %v582_v49, %v995_v0  ;;  %v649_v2 = vmul.f32 %v582_v49, %v998_v1 }
 0x15a   : > { %v587_v42 = vpop.permute.xlu1 %586 }
 0x15b   : > { %v650_v10 = vmul.f32 %v587_v42, %v1009_v5  ;;  %v651_v11 = vmul.f32 %v587_v42, %v1012_v6 }
 0x15e   : > { %v592_v38 = vpop.permute.xlu1 %591 }
 0x15f   : > { %v652_v24 = vmul.f32 %v592_v38, %v1042_v20  ;;  %v653_v29 = vmul.f32 %v592_v38, %v1032_v15 }
 0x162   : > { %v1371_v57 = vpop.permute.xlu1 %596  ;;  %v1373_v60 = vpop.permute.xlu0 %616 }
 0x166   : > { %v602_v16 = vpop.permute.xlu1 %601  ;;  %v1375_v9 = vpop.permute.xlu0 %626 }
 0x167   : > { %v656_v12 = vmul.f32 %v602_v16, %v1060_v28  ;;  %v657_v8 = vmul.f32 %v602_v16, %v1050_v23 }
 0x16a   : > { %v1377_v34 = vpop.permute.xlu1 %606  ;;  %v1379_v51 = vpop.permute.xlu0 %636 }
 0x16e   : > { %v612_v7 = vpop.permute.xlu1 %611  ;;  %v677_v45 = vpop.permute.xlu0 %676 }
 0x16f   : > { %v749_v27 = vadd.f32 %v677_v45, %v644_v41  ;;  %v750_v25 = vadd.f32 %v677_v45, %v645_v40  ;;  %v660_v59 = vmul.f32 %v612_v7, %v1078_v36  ;;  %v661_v28 = vmul.f32 %v612_v7, %v1068_v31 }
 0x171   : > { %779 = vst [vmem:[%s1388_s28] sm:$0xff] %v749_v27  ;;  %780 = vst.msk [vmem:[%s1388_s28 + $0x8] sm:$0xff] %vm253_vm0, %v750_v25  ;;  %v1492_v25 = vld [vmem:[#allocation3_spill] sm:$0xff] }
 0x172   : > { %v622_v4 = vpop.permute.xlu1 %621  ;;  %v687_v21 = vpop.permute.xlu0 %686 }
 0x173   : > { %v753_v33 = vadd.f32 %v687_v21, %v648_v50  ;;  %v754_v62 = vadd.f32 %v687_v21, %v649_v2  ;;  %v664_v63 = vmul.f32 %v622_v4, %v1096_v44  ;;  %v665_v36 = vmul.f32 %v622_v4, %v1086_v39  ;;  %v1493_v50 = vld [vmem:[#allocation2_spill] sm:$0xff] }
 0x174   : > { %v654_v44 = vmul.f32 %v1371_v57, %v1037_v18  ;;  %v655_v39 = vmul.f32 %v1371_v57, %v1029_v14 }
 0x175   : > { %783 = vst [vmem:[%s1388_s28 + $0x20] sm:$0xff] %v753_v33  ;;  %784 = vst.msk [vmem:[%s1388_s28 + $0x28] sm:$0xff] %vm253_vm0, %v754_v62  ;;  %v1494_v33 = vld [vmem:[#allocation5_spill] sm:$0xff] }
 0x176   : > { %v632_v35 = vpop.permute.xlu1 %631  ;;  %v697_v0 = vpop.permute.xlu0 %696  ;;  %v666_v62 = vmul.f32 %v1375_v9, %v1494_v33 }
 0x177   : > { %v757_v1 = vadd.f32 %v697_v0, %v652_v24  ;;  %v758_v30 = vadd.f32 %v697_v0, %v653_v29  ;;  %v668_v49 = vmul.f32 %v632_v35, %v1116_v53  ;;  %v669_v42 = vmul.f32 %v632_v35, %v1104_v47  ;;  %v1495_v24 = vld [vmem:[#allocation4_spill] sm:$0xff] }
 0x178   : > { %v658_v53 = vmul.f32 %v1377_v34, %v1055_v26  ;;  %v659_v47 = vmul.f32 %v1377_v34, %v1047_v22  ;;  %v667_v29 = vmul.f32 %v1375_v9, %v1495_v24 }
 0x179   : > { %787 = vst [vmem:[%s1388_s28 + $0x40] sm:$0xff] %v757_v1  ;;  %788 = vst.msk [vmem:[%s1388_s28 + $0x48] sm:$0xff] %vm253_vm0, %v758_v30  ;;  %v1496_v1 = vld [vmem:[#allocation7_spill] sm:$0xff] }
 0x17a   : > { %v642_v46 = vpop.permute.xlu1 %641  ;;  %v707_v20 = vpop.permute.xlu0 %706  ;;  %v670_v30 = vmul.f32 %v1379_v51, %v1496_v1 }
 0x17b   : > { %v761_v13 = vadd.f32 %v707_v20, %v656_v12  ;;  %v762_v15 = vadd.f32 %v707_v20, %v657_v8  ;;  %v672_v57 = vmul.f32 %v642_v46, %v1131_v61  ;;  %v673_v40 = vmul.f32 %v642_v46, %v1121_v55  ;;  %v1497_v12 = vld [vmem:[#allocation6_spill] sm:$0xff] }
 0x17c   : > { %v662_v61 = vmul.f32 %v1373_v60, %v1492_v25  ;;  %v663_v55 = vmul.f32 %v1373_v60, %v1493_v50  ;;  %v671_v8 = vmul.f32 %v1379_v51, %v1497_v12 }
 0x17d   : > { %791 = vst [vmem:[%s1388_s28 + $0x60] sm:$0xff] %v761_v13  ;;  %792 = vst.msk [vmem:[%s1388_s28 + $0x68] sm:$0xff] %vm253_vm0, %v762_v15 }
 0x17e   : > { %v682_v23 = vpop.permute.xlu1 %681  ;;  %v717_v3 = vpop.permute.xlu0 %716 }
 0x17f   : > { %v751_v54 = vadd.f32 %v682_v23, %v646_v17  ;;  %v752_v19 = vadd.f32 %v682_v23, %v647_v37  ;;  %v765_v52 = vadd.f32 %v717_v3, %v660_v59  ;;  %v766_v32 = vadd.f32 %v717_v3, %v661_v28 }
 0x181   : > { %781 = vst [vmem:[%s1388_s28 + $0x10] sm:$0xff] %v751_v54  ;;  %782 = vst.msk [vmem:[%s1388_s28 + $0x18] sm:$0xff] %vm253_vm0, %v752_v19 }
 0x182   : > { %795 = vst [vmem:[%s1388_s28 + $0x80] sm:$0xff] %v765_v52  ;;  %796 = vst.msk [vmem:[%s1388_s28 + $0x88] sm:$0xff] %vm253_vm0, %v766_v32  ;;  %v692_v31 = vpop.permute.xlu1 %691  ;;  %v727_v56 = vpop.permute.xlu0 %726 }
 0x183   : > { %v755_v48 = vadd.f32 %v692_v31, %v650_v10  ;;  %v756_v5 = vadd.f32 %v692_v31, %v651_v11  ;;  %v769_v43 = vadd.f32 %v727_v56, %v664_v63  ;;  %v770_v6 = vadd.f32 %v727_v56, %v665_v36 }
 0x185   : > { %785 = vst [vmem:[%s1388_s28 + $0x30] sm:$0xff] %v755_v48  ;;  %786 = vst.msk [vmem:[%s1388_s28 + $0x38] sm:$0xff] %vm253_vm0, %v756_v5 }
 0x186   : > { %799 = vst [vmem:[%s1388_s28 + $0xa0] sm:$0xff] %v769_v43  ;;  %800 = vst.msk [vmem:[%s1388_s28 + $0xa8] sm:$0xff] %vm253_vm0, %v770_v6  ;;  %v702_v58 = vpop.permute.xlu1 %701  ;;  %v737_v38 = vpop.permute.xlu0 %736 }
 0x187   : > { %v759_v18 = vadd.f32 %v702_v58, %v654_v44  ;;  %v760_v16 = vadd.f32 %v702_v58, %v655_v39  ;;  %v773_v41 = vadd.f32 %v737_v38, %v668_v49  ;;  %v774_v14 = vadd.f32 %v737_v38, %v669_v42 }
 0x189   : > { %789 = vst [vmem:[%s1388_s28 + $0x50] sm:$0xff] %v759_v18  ;;  %790 = vst.msk [vmem:[%s1388_s28 + $0x58] sm:$0xff] %vm253_vm0, %v760_v16 }
 0x18a   : > { %803 = vst [vmem:[%s1388_s28 + $0xc0] sm:$0xff] %v773_v41  ;;  %804 = vst.msk [vmem:[%s1388_s28 + $0xc8] sm:$0xff] %vm253_vm0, %v774_v14  ;;  %v712_v7 = vpop.permute.xlu1 %711  ;;  %v747_v45 = vpop.permute.xlu0 %746 }
 0x18b   : > { %v763_v26 = vadd.f32 %v712_v7, %v658_v53  ;;  %v764_v27 = vadd.f32 %v712_v7, %v659_v47  ;;  %v777_v22 = vadd.f32 %v747_v45, %v672_v57  ;;  %v778_v34 = vadd.f32 %v747_v45, %v673_v40 }
 0x18d   : > { %793 = vst [vmem:[%s1388_s28 + $0x70] sm:$0xff] %v763_v26  ;;  %794 = vst.msk [vmem:[%s1388_s28 + $0x78] sm:$0xff] %vm253_vm0, %v764_v27 }
 0x18e   : > { %807 = vst [vmem:[%s1388_s28 + $0xe0] sm:$0xff] %v777_v22  ;;  %808 = vst.msk [vmem:[%s1388_s28 + $0xe8] sm:$0xff] %vm253_vm0, %v778_v34  ;;  %v722_v2 = vpop.permute.xlu1 %721 }
 0x18f   : > { %v767_v4 = vadd.f32 %v722_v2, %v662_v61  ;;  %v768_v21 = vadd.f32 %v722_v2, %v663_v55 }
 0x191   : > { %797 = vst [vmem:[%s1388_s28 + $0x90] sm:$0xff] %v767_v4  ;;  %798 = vst.msk [vmem:[%s1388_s28 + $0x98] sm:$0xff] %vm253_vm0, %v768_v21 }
 0x192   : > { %v732_v60 = vpop.permute.xlu1 %731 }
 0x193   : > { %v771_v35 = vadd.f32 %v732_v60, %v666_v62  ;;  %v772_v0 = vadd.f32 %v732_v60, %v667_v29 }
 0x195   : > { %801 = vst [vmem:[%s1388_s28 + $0xb0] sm:$0xff] %v771_v35  ;;  %802 = vst.msk [vmem:[%s1388_s28 + $0xb8] sm:$0xff] %vm253_vm0, %v772_v0 }
 0x196   : > { %v742_v46 = vpop.permute.xlu1 %741 }
 0x197   : > { %v775_v20 = vadd.f32 %v742_v46, %v670_v30  ;;  %v776_v13 = vadd.f32 %v742_v46, %v671_v8 }
 0x199   : > { %805 = vst [vmem:[%s1388_s28 + $0xd0] sm:$0xff] %v775_v20  ;;  %806 = vst.msk [vmem:[%s1388_s28 + $0xd8] sm:$0xff] %vm253_vm0, %v776_v13 }
 0x19a PF: > { %s13_s12 = sadd.s32 1, %s953_s12  }
 0x19b   : > { %p10_p4 = scmp.ge.s32.totalorder %s13_s12, 10  }
 0x19d   :  { %12 = sbr.rel (!%p10_p4) target bundleno = 1 (0x1), region = 68 }

</bundles_post_ra>
